<compile_context>
chip_gen: v6e
topology: v6e:2x2x1
jax: 0.10.0
libtpu: 0.0.40
codegen_flags: <defaults>
</compile_context>

<pallas_src>
import functools

import jax
import jax.numpy as jnp
import numpy as np
from jax import lax
from jax.experimental import pallas as pl
from jax.experimental.pallas import tpu as pltpu


def _round_up(x, m):
    return ((x + m - 1) // m) * m


def _smoothquant_kernel(a_ref, b_ref, scale_ref, amax_ref, bmax_ref,
                        aacc_ref, bacc_ref, *,
                        n_a_tiles, n_b_tiles, n_row_tiles,
                        rows_a, rows_b, tr_a, tr_b, acc_ra,
                        mask_a, mask_b, alpha, scale_min):
    ri = pl.program_id(1)  # row (reduction) axis -- last grid axis

    @pl.when(ri == 0)
    def _init():
        aacc_ref[...] = jnp.zeros_like(aacc_ref)
        bacc_ref[...] = jnp.zeros_like(bacc_ref)

    # --- activation stream: native-dtype abs + vreg-aligned elementwise max ---
    def _acc_a(masked):
        def body():
            a = jnp.abs(a_ref[...])                              # native dtype, VPU
            if masked:
                # select (not multiply) so OOB NaN/Inf garbage rows cannot leak in
                rid = lax.broadcasted_iota(jnp.int32, a.shape, 0)
                a = jnp.where(rid < rows_a - ri * tr_a, a, jnp.zeros_like(a))
            # Group rows into vreg-aligned slabs; reducing over the leading axis is
            # pure elementwise max (no per-iteration cross-sublane XLU reduce).
            g = jnp.max(a.reshape(tr_a // acc_ra, acc_ra, a.shape[-1]), axis=0)
            aacc_ref[...] = jnp.maximum(aacc_ref[...], g.astype(jnp.float32))
        return body

    if not mask_a:
        if n_a_tiles == n_row_tiles:
            _acc_a(False)()
        else:
            pl.when(ri < n_a_tiles)(_acc_a(False))
    else:
        # mask ONLY the final partial tile; steady-state steps stay unmasked
        if n_a_tiles > 1:
            pl.when(ri < n_a_tiles - 1)(_acc_a(False))
        pl.when(ri == n_a_tiles - 1)(_acc_a(True))

    # --- weight: resident (n_b_tiles == 1, reduced once at ri == 0) or streamed ---
    def _acc_b(masked):
        def body():
            b = jnp.abs(b_ref[...])
            if masked:
                rid = lax.broadcasted_iota(jnp.int32, b.shape, 0)
                b = jnp.where(rid < rows_b - ri * tr_b, b, jnp.zeros_like(b))
            bacc_ref[...] = jnp.maximum(
                bacc_ref[...],
                jnp.max(b, axis=0, keepdims=True).astype(jnp.float32))
        return body

    if not mask_b:
        if n_b_tiles == n_row_tiles:
            _acc_b(False)()
        else:
            pl.when(ri < n_b_tiles)(_acc_b(False))
    else:
        if n_b_tiles > 1:
            pl.when(ri < n_b_tiles - 1)(_acc_b(False))
        pl.when(ri == n_b_tiles - 1)(_acc_b(True))

    # --- finalize: single cross-sublane reduce + scale math, once per channel tile ---
    @pl.when(ri == n_row_tiles - 1)
    def _final():
        a_max = jnp.max(aacc_ref[...], axis=0, keepdims=True)   # (1, ct)
        b_max_raw = bacc_ref[...]                                # (1, ct)
        b_max = jnp.maximum(b_max_raw, scale_min)
        if alpha == 0.5:
            scale = jnp.sqrt(a_max) * lax.rsqrt(b_max)           # EUP, avoids pow
        else:
            scale = a_max ** alpha / b_max ** (1.0 - alpha)
        scale = jnp.maximum(scale, scale_min)
        scale_ref[...] = scale.astype(scale_ref.dtype)
        amax_ref[...] = a_max.astype(amax_ref.dtype)
        bmax_ref[...] = b_max_raw.astype(bmax_ref.dtype)


def activation_weight_smoothquant(inp, wgt, *, ch_axis=-1, win_ch_axis=-1,
                                  migration_strength=0.5, scale_min=1e-5,
                                  _block_budget=None):
    """Returns (scale, input_maxabs, weight_maxabs), each of shape (C,)."""
    c = inp.shape[ch_axis]
    assert wgt.shape[win_ch_axis] == c, "channel dims of inp and wgt must match"

    # Glue: channel axis -> lane (last) dim, flatten the rest to rows.  When the
    # channel is already last this is a free reshape (no HBM copy).
    # TODO(synk): for channel-not-last layouts (e.g. NCHW conv activations) this
    # moveaxis materializes a transposed HBM copy (~3x HBM traffic); a
    # layout-native kernel variant would avoid it.
    a2 = jnp.moveaxis(inp, ch_axis, -1).reshape(-1, c)
    b2 = jnp.moveaxis(wgt, win_ch_axis, -1).reshape(-1, c)
    ra, rb = a2.shape[0], b2.shape[0]
    a_item, b_item = a2.dtype.itemsize, b2.dtype.itemsize

    # --- VMEM budget derived from the actual part (64 MiB v7x, 128 MiB v5e/v6e) ---
    try:
        vmem_cap = int(pltpu.get_tpu_info().vmem_capacity_bytes)
    except Exception:
        vmem_cap = 64 * 1024 * 1024          # conservative (v7x-sized) fallback
    vmem_ceiling = min(vmem_cap * 3 // 4, vmem_cap - (16 << 20))
    block_budget = (8 << 20) if vmem_cap <= (64 << 20) else (16 << 20)
    if _block_budget is not None:            # test hook: force multi-tile streaming
        block_budget = int(_block_budget)

    # --- channel (lane) tile: largest multiple of 128 dividing C, <= max(128, C/2)
    # so the "parallel" channel axis spans both v7x TensorCores when C >= 256.
    # TODO(synk): C not a multiple of 128 falls back to one full-width channel tile.
    # TODO(synk): when n_c_tiles == 1 (small C), a parallel row-split axis with two
    # partial accumulators + a tiny max-combine would recover v7x megacore.
    ct = c
    if c % 128 == 0:
        cap = max(128, min(512, c // 2))
        for m in range(128, cap + 1, 128):
            if c % m == 0:
                ct = m
    n_c_tiles = c // ct

    # --- f32 accumulator slab: widen for narrow channel tiles (>= 4 vregs) ---
    pack_a = max(8, 32 // a_item)                   # 8 f32 / 16 bf16 / 32 int8
    slab_target = _round_up(max(pack_a, (4 * 8 * 128) // max(ct, 1)), 8)
    acc_ra = min(slab_target, max(pack_a, _round_up(ra, pack_a)))
    acc_ra = max(pack_a, (acc_ra // pack_a) * pack_a)

    # --- activation row tile (hot, streamed): constant byte budget per block ---
    rows_budget_a = max(acc_ra, block_budget // (ct * a_item))
    tr_a = max(acc_ra, (rows_budget_a // acc_ra) * acc_ra)
    tr_a = min(tr_a, _round_up(ra, acc_ra))
    n_a_tiles = -(-ra // tr_a)
    mask_a = (ra % tr_a) != 0

    # --- weight rows: fully resident per channel tile if small, else streamed ---
    pack_b = max(8, 32 // b_item)
    resident_limit = min(4 << 20, block_budget)
    if rb * ct * b_item <= resident_limit:
        tr_b, n_b_tiles, mask_b = rb, 1, False
        weight_resident = True
    else:
        weight_resident = False
        rows_budget_b = max(pack_b, block_budget // (ct * b_item))
        tr_b = max(pack_b, (rows_budget_b // pack_b) * pack_b)
        tr_b = min(tr_b, _round_up(rb, pack_b))
        n_b_tiles = -(-rb // tr_b)
        mask_b = (rb % tr_b) != 0

    n_row_tiles = max(n_a_tiles, n_b_tiles)

    kernel = functools.partial(
        _smoothquant_kernel,
        n_a_tiles=n_a_tiles, n_b_tiles=n_b_tiles, n_row_tiles=n_row_tiles,
        rows_a=ra, rows_b=rb, tr_a=tr_a, tr_b=tr_b, acc_ra=acc_ra,
        mask_a=mask_a, mask_b=mask_b,
        alpha=float(migration_strength), scale_min=float(scale_min))

    out_shapes = (jax.ShapeDtypeStruct((1, c), jnp.float32),   # scale ("SAME" = identity)
                  jax.ShapeDtypeStruct((1, c), inp.dtype),     # input_maxabs (torch dtype)
                  jax.ShapeDtypeStruct((1, c), wgt.dtype))     # weight_maxabs (torch dtype)

    a_index_map = lambda ci, ri, n=n_a_tiles: (jnp.minimum(ri, n - 1), ci)
    b_index_map = lambda ci, ri, n=n_b_tiles: (jnp.minimum(ri, n - 1), ci)
    out_map = lambda ci, ri: (0, ci)

    def _run(single_buffer_weight):
        if single_buffer_weight:
            # resident weight: one DMA per channel tile -> single buffer frees VMEM
            b_spec = pl.BlockSpec((tr_b, ct), b_index_map,
                                  pipeline_mode=pl.Buffered(1))
            n_b_bufs = 1
        else:
            b_spec = pl.BlockSpec((tr_b, ct), b_index_map)
            n_b_bufs = 2
        vmem_est = (2 * tr_a * ct * a_item + n_b_bufs * tr_b * ct * b_item
                    + (acc_ra + 1) * ct * 4 + 3 * 2 * ct * 4)
        vmem_limit = int(min(vmem_ceiling,
                             max(32 << 20, int(vmem_est * 1.5) + (2 << 20))))
        return pl.pallas_call(
            kernel,
            out_shape=out_shapes,
            grid_spec=pltpu.PrefetchScalarGridSpec(
                num_scalar_prefetch=0,
                grid=(n_c_tiles, n_row_tiles),                 # reduction axis last
                in_specs=[pl.BlockSpec((tr_a, ct), a_index_map), b_spec],
                out_specs=[pl.BlockSpec((1, ct), out_map),
                           pl.BlockSpec((1, ct), out_map),
                           pl.BlockSpec((1, ct), out_map)],
                scratch_shapes=[
                    pltpu.VMEM((acc_ra, ct), jnp.float32),
                    pltpu.VMEM((1, ct), jnp.float32),
                ],
            ),
            compiler_params=pltpu.CompilerParams(
                dimension_semantics=("parallel", "arbitrary"),
                vmem_limit_bytes=vmem_limit),
        )(a2, b2)

    want_single = (weight_resident and n_row_tiles > 1 and hasattr(pl, "Buffered"))
    if want_single:
        try:
            scale, a_maxabs, b_maxabs = _run(True)
        except Exception:
            scale, a_maxabs, b_maxabs = _run(False)   # safe fallback: double-buffered
    else:
        scale, a_maxabs, b_maxabs = _run(False)

    return scale[0], a_maxabs[0], b_maxabs[0]


def _check_case(inp, wgt, **kwargs):
    scale, a_mx, b_mx = activation_weight_smoothquant(inp, wgt, **kwargs)
    jax.block_until_ready(scale)

    # Pure-JAX reference (same math as the PyTorch module's forward).
    red_a = tuple(range(inp.ndim - 1))
    red_b = tuple(range(wgt.ndim - 1))
    ref_a = jnp.max(jnp.abs(inp), axis=red_a)
    ref_b = jnp.max(jnp.abs(wgt), axis=red_b)
    ref_scale = jnp.maximum(
        ref_a.astype(jnp.float32) ** 0.5
        / jnp.maximum(ref_b.astype(jnp.float32), 1e-5) ** 0.5, 1e-5)

    np.testing.assert_allclose(np.asarray(a_mx, dtype=np.float32),
                               np.asarray(ref_a, dtype=np.float32), rtol=1e-6)
    np.testing.assert_allclose(np.asarray(b_mx, dtype=np.float32),
                               np.asarray(ref_b, dtype=np.float32), rtol=1e-6)
    np.testing.assert_allclose(np.asarray(scale), np.asarray(ref_scale),
                               rtol=2e-5, atol=1e-7)


if __name__ == "__main__":
    key = jax.random.PRNGKey(0)
    k1, k2, k3, k4, k5, k6 = jax.random.split(key, 6)

    # Case 1: tiny Linear-style shapes, non-128 channel dim (single channel tile).
    inp1 = jax.random.normal(k1, (2, 8, 32), dtype=jnp.float32)
    wgt1 = jax.random.normal(k2, (64, 32), dtype=jnp.float32) * 0.1
    _check_case(inp1, wgt1, ch_axis=-1, win_ch_axis=-1,
                migration_strength=0.5, scale_min=1e-5)

    # Case 2: bf16, C=256 -> two channel tiles, partial row tile (masked path).
    inp2 = jax.random.normal(k3, (4, 25, 256), dtype=jnp.bfloat16)
    wgt2 = (jax.random.normal(k4, (64, 256), dtype=jnp.bfloat16) * 0.1)
    _check_case(inp2, wgt2, ch_axis=-1, win_ch_axis=-1,
                migration_strength=0.5, scale_min=1e-5)

    # Case 3: tiny block budget forces multi row tiles + masked tail + resident
    # single-buffered weight (exercises the Buffered(1) path and its fallback).
    inp3 = jax.random.normal(k5, (2, 25, 256), dtype=jnp.float32)
    wgt3 = jax.random.normal(k6, (16, 256), dtype=jnp.float32) * 0.1
    _check_case(inp3, wgt3, ch_axis=-1, win_ch_axis=-1,
                migration_strength=0.5, scale_min=1e-5,
                _block_budget=16 * 1024)

    print("KERNEL_OK")
</pallas_src>

<mosaic_0001>
module attributes {stable_mosaic.version = 11 : i64} {
  func.func @_smoothquant_kernel(%arg0: i32, %arg1: i32, %arg2: memref<16x32xf32, #tpu.memory_space<vmem>>, %arg3: memref<64x32xf32, #tpu.memory_space<vmem>>, %arg4: memref<1x32xf32, #tpu.memory_space<vmem>>, %arg5: memref<1x32xf32, #tpu.memory_space<vmem>>, %arg6: memref<1x32xf32, #tpu.memory_space<vmem>>, %arg7: memref<16x32xf32, #tpu.memory_space<vmem>>, %arg8: memref<1x32xf32, #tpu.memory_space<vmem>>) attributes {dimension_semantics = [#tpu.dimension_semantics<parallel>, #tpu.dimension_semantics<arbitrary>], iteration_bounds = array<i64: 1, 1>, scalar_prefetch = 0 : i64, scratch_operands = 2 : i64, tpu.core_type = #tpu.core_type<tc>, window_params = [{transform_indices = @transform_0, window_bounds = array<i64: 16, 32>}, {transform_indices = @transform_1, window_bounds = array<i64: 64, 32>}, {transform_indices = @transform_2, window_bounds = array<i64: 1, 32>}, {transform_indices = @transform_3, window_bounds = array<i64: 1, 32>}, {transform_indices = @transform_4, window_bounds = array<i64: 1, 32>}]} {
    %c0_i32 = arith.constant 0 : i32
    %0 = arith.cmpi eq, %arg1, %c0_i32 : i32
    %1 = arith.extui %0 : i1 to i32
    %c0_i32_0 = arith.constant 0 : i32
    %2 = arith.cmpi ne, %1, %c0_i32_0 : i32
    scf.if %2 {
      %cst_15 = arith.constant 0.000000e+00 : f32
      %20 = vector.broadcast %cst_15 : f32 to vector<16x32xf32>
      %c0_16 = arith.constant 0 : index
      %c0_17 = arith.constant 0 : index
      %21 = vector.load %arg7[%c0_16, %c0_17] : memref<16x32xf32, #tpu.memory_space<vmem>>, vector<16x32xf32>
      tpu.vector_store %arg7[%c0_16, %c0_17], %20 {strides = array<i32>} : memref<16x32xf32, #tpu.memory_space<vmem>>, vector<16x32xf32>,
      %cst_18 = arith.constant 0.000000e+00 : f32
      %22 = vector.broadcast %cst_18 : f32 to vector<1x32xf32>
      %c0_19 = arith.constant 0 : index
      %c0_20 = arith.constant 0 : index
      %23 = vector.load %arg8[%c0_19, %c0_20] : memref<1x32xf32, #tpu.memory_space<vmem>>, vector<1x32xf32>
      tpu.vector_store %arg8[%c0_19, %c0_20], %22 {strides = array<i32>} : memref<1x32xf32, #tpu.memory_space<vmem>>, vector<1x32xf32>,
    } else {
    }
    %c0 = arith.constant 0 : index
    %c0_1 = arith.constant 0 : index
    %3 = vector.load %arg2[%c0, %c0_1] : memref<16x32xf32, #tpu.memory_space<vmem>>, vector<16x32xf32>
    %4 = math.absf %3 : vector<16x32xf32>
    %5 = vector.shape_cast %4 : vector<16x32xf32> to vector<1x16x32xf32>
    %cst = arith.constant dense<0xFF800000> : vector<16x32xf32>
    %6 = vector.multi_reduction <maximumf>, %5, %cst [0] : vector<1x16x32xf32> to vector<16x32xf32>
    %c0_2 = arith.constant 0 : index
    %c0_3 = arith.constant 0 : index
    %7 = vector.load %arg7[%c0_2, %c0_3] : memref<16x32xf32, #tpu.memory_space<vmem>>, vector<16x32xf32>
    %8 = arith.maximumf %7, %6 : vector<16x32xf32>
    %c0_4 = arith.constant 0 : index
    %c0_5 = arith.constant 0 : index
    %9 = vector.load %arg7[%c0_4, %c0_5] : memref<16x32xf32, #tpu.memory_space<vmem>>, vector<16x32xf32>
    tpu.vector_store %arg7[%c0_4, %c0_5], %8 {strides = array<i32>} : memref<16x32xf32, #tpu.memory_space<vmem>>, vector<16x32xf32>,
    %c0_6 = arith.constant 0 : index
    %c0_7 = arith.constant 0 : index
    %10 = vector.load %arg3[%c0_6, %c0_7] : memref<64x32xf32, #tpu.memory_space<vmem>>, vector<64x32xf32>
    %11 = math.absf %10 : vector<64x32xf32>
    %c0_8 = arith.constant 0 : index
    %c0_9 = arith.constant 0 : index
    %12 = vector.load %arg8[%c0_8, %c0_9] : memref<1x32xf32, #tpu.memory_space<vmem>>, vector<1x32xf32>
    %cst_10 = arith.constant dense<0xFF800000> : vector<32xf32>
    %13 = vector.multi_reduction <maximumf>, %11, %cst_10 [0] : vector<64x32xf32> to vector<32xf32>
    %14 = vector.shape_cast %13 : vector<32xf32> to vector<1x32xf32>
    %15 = arith.maximumf %12, %14 : vector<1x32xf32>
    %c0_11 = arith.constant 0 : index
    %c0_12 = arith.constant 0 : index
    %16 = vector.load %arg8[%c0_11, %c0_12] : memref<1x32xf32, #tpu.memory_space<vmem>>, vector<1x32xf32>
    tpu.vector_store %arg8[%c0_11, %c0_12], %15 {strides = array<i32>} : memref<1x32xf32, #tpu.memory_space<vmem>>, vector<1x32xf32>,
    %c0_i32_13 = arith.constant 0 : i32
    %17 = arith.cmpi eq, %arg1, %c0_i32_13 : i32
    %18 = arith.extui %17 : i1 to i32
    %c0_i32_14 = arith.constant 0 : i32
    %19 = arith.cmpi ne, %18, %c0_i32_14 : i32
    scf.if %19 {
      %c0_15 = arith.constant 0 : index
      %c0_16 = arith.constant 0 : index
      %20 = vector.load %arg7[%c0_15, %c0_16] : memref<16x32xf32, #tpu.memory_space<vmem>>, vector<16x32xf32>
      %cst_17 = arith.constant dense<0xFF800000> : vector<32xf32>
      %21 = vector.multi_reduction <maximumf>, %20, %cst_17 [0] : vector<16x32xf32> to vector<32xf32>
      %22 = vector.shape_cast %21 : vector<32xf32> to vector<1x32xf32>
      %c0_18 = arith.constant 0 : index
      %c0_19 = arith.constant 0 : index
      %23 = vector.load %arg8[%c0_18, %c0_19] : memref<1x32xf32, #tpu.memory_space<vmem>>, vector<1x32xf32>
      %cst_20 = arith.constant 9.99999974E-6 : f32
      %24 = vector.broadcast %cst_20 : f32 to vector<1x32xf32>
      %25 = arith.maximumf %23, %24 : vector<1x32xf32>
      %26 = math.sqrt %22 : vector<1x32xf32>
      %27 = math.rsqrt %25 : vector<1x32xf32>
      %28 = arith.mulf %26, %27 : vector<1x32xf32>
      %cst_21 = arith.constant 9.99999974E-6 : f32
      %29 = vector.broadcast %cst_21 : f32 to vector<1x32xf32>
      %30 = arith.maximumf %28, %29 : vector<1x32xf32>
      %c0_22 = arith.constant 0 : index
      %c0_23 = arith.constant 0 : index
      %31 = vector.load %arg4[%c0_22, %c0_23] : memref<1x32xf32, #tpu.memory_space<vmem>>, vector<1x32xf32>
      tpu.vector_store %arg4[%c0_22, %c0_23], %30 {strides = array<i32>} : memref<1x32xf32, #tpu.memory_space<vmem>>, vector<1x32xf32>,
      %c0_24 = arith.constant 0 : index
      %c0_25 = arith.constant 0 : index
      %32 = vector.load %arg5[%c0_24, %c0_25] : memref<1x32xf32, #tpu.memory_space<vmem>>, vector<1x32xf32>
      tpu.vector_store %arg5[%c0_24, %c0_25], %22 {strides = array<i32>} : memref<1x32xf32, #tpu.memory_space<vmem>>, vector<1x32xf32>,
      %c0_26 = arith.constant 0 : index
      %c0_27 = arith.constant 0 : index
      %33 = vector.load %arg6[%c0_26, %c0_27] : memref<1x32xf32, #tpu.memory_space<vmem>>, vector<1x32xf32>
      tpu.vector_store %arg6[%c0_26, %c0_27], %23 {strides = array<i32>} : memref<1x32xf32, #tpu.memory_space<vmem>>, vector<1x32xf32>,
    } else {
    }
    return
  }
  func.func @transform_0(%arg0: i32, %arg1: i32) -> (i32, i32) {
    %c0_i32 = arith.constant 0 : i32
    %0 = arith.minsi %arg1, %c0_i32 : i32
    %c0_i32_0 = arith.constant 0 : i32
    return %0, %arg0 : i32, i32
  }
  func.func @transform_1(%arg0: i32, %arg1: i32) -> (i32, i32) {
    %c0_i32 = arith.constant 0 : i32
    %0 = arith.minsi %arg1, %c0_i32 : i32
    %c0_i32_0 = arith.constant 0 : i32
    return %0, %arg0 : i32, i32
  }
  func.func @transform_2(%arg0: i32, %arg1: i32) -> (i32, i32) {
    %c0_i32 = arith.constant 0 : i32
    %c0_i32_0 = arith.constant 0 : i32
    return %c0_i32, %arg0 : i32, i32
  }
  func.func @transform_3(%arg0: i32, %arg1: i32) -> (i32, i32) {
    %c0_i32 = arith.constant 0 : i32
    %c0_i32_0 = arith.constant 0 : i32
    return %c0_i32, %arg0 : i32, i32
  }
  func.func @transform_4(%arg0: i32, %arg1: i32) -> (i32, i32) {
    %c0_i32 = arith.constant 0 : i32
    %c0_i32_0 = arith.constant 0 : i32
    return %c0_i32, %arg0 : i32, i32
  }
}

</mosaic_0001>

<bundles_post_ra>
// kernel: tpu_custom_call.1
= control target key start
LH: loop header
LB: loop body
LE: loop exit
PB: predicated region body
PF: predicated region fallthrough
CT: control target
= control target key end

     0   :  { %10 = vsyncpa [#allocation5], 0  ;;  %vm20_vm0 = vcmask 261120   ;;  %vm23_vm1 = vcmask 253952   ;;  %v219_v3 = vmov 0.0   ;;  %s306_s0 = inlined_call_operand.vmem [shape: f32[16,32], index: 0, kind: input, shape index: {}]   ;;  %s307_s1 = inlined_call_operand.vmem [shape: f32[64,32], index: 1, kind: input, shape index: {}]   ;;  %s308_s2 = inlined_call_operand.hbm [shape: f32[1,32], index: 2, kind: output, shape index: {0}]   ;;  %s309_s3 = inlined_call_operand.hbm [shape: f32[1,32], index: 3, kind: output, shape index: {1}]   ;;  %s310_s4 = inlined_call_operand.hbm [shape: f32[1,32], index: 4, kind: output, shape index: {2}]  }
   0x1   :  { %v25_v0 = vld [vmem:[%s306_s0] sm:$0xff]  ;;  %v26_v1 = vld [vmem:[%s306_s0 + $0x8] sm:$0xff]  ;;  %21 = vst.msk [vmem:[#allocation2] sm:$0xff] %vm20_vm0, %v219_v3  ;;  %22 = vst.msk [vmem:[#allocation2 + $0x8] sm:$0xff] %vm20_vm0, %v219_v3 }
   0x2   :  { %v36_v2 = vld [vmem:[%s307_s1] sm:$0xff]  ;;  %v27_v4 = vand.u32 2147483647, %v25_v0  ;;  %v28_v5 = vand.u32 2147483647, %v26_v1  ;;  %v37_v6 = vld [vmem:[%s307_s1 + $0x8] sm:$0xff] }
   0x3   :  { %24 = vst.msk [vmem:[#allocation3] sm:$0x1] %vm23_vm1, %v219_v3  ;;  %v38_v7 = vld [vmem:[%s307_s1 + $0x10] sm:$0xff]  ;;  %v39_v8 = vld [vmem:[%s307_s1 + $0x18] sm:$0xff]  ;;  %v40_v9 = vld [vmem:[%s307_s1 + $0x20] sm:$0xff] }
   0x4   :  { %v41_v10 = vld [vmem:[%s307_s1 + $0x28] sm:$0xff]  ;;  %v44_v11 = vand.u32 2147483647, %v36_v2  ;;  %v42_v12 = vld [vmem:[%s307_s1 + $0x30] sm:$0xff]  ;;  %v43_v13 = vld [vmem:[%s307_s1 + $0x38] sm:$0xff] }
   0x5   :  { %v45_v14 = vand.u32 2147483647, %v37_v6  ;;  %v46_v15 = vand.u32 2147483647, %v38_v7  ;;  %v47_v16 = vand.u32 2147483647, %v39_v8 }
   0x6   :  { %v48_v17 = vand.u32 2147483647, %v40_v9  ;;  %v49_v18 = vand.u32 2147483647, %v41_v10  ;;  %v50_v19 = vand.u32 2147483647, %v42_v12 }
   0x7   :  { %v51_v20 = vand.u32 2147483647, %v43_v13  ;;  %v53_v21 = vsel %vm20_vm0, %v44_v11, -inf  ;;  %v54_v22 = vsel %vm20_vm0, %v45_v14, -inf  ;;  %v55_v23 = vsel %vm20_vm0, %v46_v15, -inf }
   0x8   :  { %v56_v24 = vsel %vm20_vm0, %v47_v16, -inf  ;;  %v57_v25 = vsel %vm20_vm0, %v48_v17, -inf  ;;  %v59_v26 = vsel %vm20_vm0, %v49_v18, -inf }
   0x9   :  { %11 = vsyncpa [#allocation7], 0  ;;  %v58_v27 = vmax.f32 %v53_v21, %v57_v25  ;;  %v60_v28 = vmax.f32 %v54_v22, %v59_v26  ;;  %v61_v29 = vsel %vm20_vm0, %v50_v19, -inf  ;;  %v63_v30 = vsel %vm20_vm0, %v51_v20, -inf  ;;  %v29_v31 = vld [vmem:[#allocation2] sm:$0xff]  ;;  %v30_v32 = vld [vmem:[#allocation2 + $0x8] sm:$0xff] }
   0xa   :  { %v62_v33 = vmax.f32 %v55_v23, %v61_v29  ;;  %v64_v34 = vmax.f32 %v56_v24, %v63_v30  ;;  %v31_v35 = vmax.f32 %v29_v31, %v27_v4  ;;  %v32_v36 = vmax.f32 %v30_v32, %v28_v5  ;;  %v52_v51 = vld [vmem:[#allocation3] sm:$0x1]  ;;  %s220_s1 = smov [#allocation6]   ;;  %s221_s9 = smov [#allocation8]  }
   0xb   :  { %v65_v37 = vmax.f32 %v58_v27, %v60_v28  ;;  %s122_s8 = sshll.u32 %s220_s1, 4  ;;  %s132_s10 = sshll.u32 %s221_s9, 4  ;;  %s123_s8 = int_to_ptr.vmem [resolvable:$true] %s122_s8  ;;  %s133_s10 = int_to_ptr.vmem [resolvable:$true] %s132_s10 }
   0xc   :  { %v66_v38 = vmax.f32 %v62_v33, %v64_v34  ;;  %34 = vst.msk [vmem:[#allocation2] sm:$0xff] %vm20_vm0, %v31_v35  ;;  %35 = vst.msk [vmem:[#allocation2 + $0x8] sm:$0xff] %vm20_vm0, %v32_v36  ;;  %s155_s11 = scalar_lea.vmem %s123_s8, 16  ;;  %s159_s12 = scalar_lea.vmem %s123_s8, 32 }
   0xd   :  { %p156_p0 = scmp.ne.s32.totalorder %s123_s8, %s155_s11  ;;  %p160_p1 = scmp.lt.s32.totalorder %s123_s8, %s123_s8 }
   0xe   :  { %v67_v39 = vmax.f32 %v65_v37, %v66_v38  ;;  %p161_p2 = scmp.lt.s32.totalorder %s159_s12, %s155_s11 }
  0x10   :  { %v68_v40 = vrot.slane %v67_v39, 4  ;;  %p162_p3 = por %p161_p2, %p160_p1 }
  0x12   :  { %v69_v41 = vmax.f32 %v67_v39, %v68_v40  ;;  %p163_p4 = pnand %p162_p3, %p156_p0 }
  0x13   :  { %v80_v42 = vld [vmem:[#allocation2] sm:$0xff]  ;;  %v81_v43 = vld [vmem:[#allocation2 + $0x8] sm:$0xff] }
  0x14   :  { %v70_v44 = vrot.slane %v69_v41, 2  ;;  %v82_v45 = vsel %vm20_vm0, %v80_v42, -inf  ;;  %v83_v46 = vsel %vm20_vm0, %v81_v43, -inf }
  0x15   :  { %v84_v48 = vmax.f32 %v82_v45, %v83_v46 }
  0x16   :  { %v71_v47 = vmax.f32 %v69_v41, %v70_v44 }
  0x17   :  { %v85_v50 = vrot.slane %v84_v48, 4 }
  0x18   :  { %v72_v49 = vrot.slane %v71_v47, 1 }
  0x19   :  { %v86_v53 = vmax.f32 %v84_v48, %v85_v50 }
  0x1a   :  { %v73_v52 = vmax.f32 %v71_v47, %v72_v49 }
  0x1b   :  { %v87_v55 = vrot.slane %v86_v53, 2 }
  0x1c   :  { %v74_v54 = vmax.f32 %v52_v51, %v73_v52 }
  0x1d   :  { %v88_v56 = vmax.f32 %v86_v53, %v87_v55 }
  0x1e   :  { %76 = vst.msk [vmem:[#allocation3] sm:$0x1] %vm23_vm1, %v74_v54 }
  0x1f   :  { %v89_v57 = vrot.slane %v88_v56, 1 }
  0x21   :  { %v90_v58 = vmax.f32 %v88_v56, %v89_v57 }
  0x23   :  { %104 = vst.msk [vmem:[#allocation6] sm:$0x1] %vm23_vm1, %v90_v58  ;;  %151 = vrsqrt.f32 %v90_v58 }
  0x25   :  { %v91_v59 = vld [vmem:[#allocation3] sm:$0x1] }
  0x26   :  { %166 = shalt.err (!%p163_p4)
}
  0x27   :  { %125 = dma.vmem_to_hbm [thread:$0]  %s123_s8, 16, %s309_s3, [#allocation7]   ;;  %v92_v60 = vmax.f32 %v91_v59, 1e-05  ;;  %105 = vst.msk [vmem:[#allocation8] sm:$0x1] %vm23_vm1, %v91_v59 }
  0x28   :  { %s175_s15 = scalar_lea.vmem %s133_s10, 16  ;;  %s179_s16 = scalar_lea.vmem %s133_s10, 32 }
  0x29   :  { %p176_p5 = scmp.ne.s32.totalorder %s133_s10, %s175_s15  ;;  %p180_p6 = scmp.lt.s32.totalorder %s133_s10, %s133_s10 }
  0x2a   :  { %p181_p7 = scmp.lt.s32.totalorder %s179_s16, %s175_s15 }
  0x2c   :  { %p182_p8 = por %p181_p7, %p180_p6 }
  0x2e   :  { %p183_p9 = pnand %p182_p8, %p176_p5 }
  0x30   :  { %186 = shalt.err (!%p183_p9)
}
  0x31   :  { %135 = dma.vmem_to_hbm [thread:$0]  %s133_s10, 16, %s310_s4, [#allocation7]   ;;  %153 = vrsqrt.f32 %v92_v60  ;;  %v152_v61 = vpop.eup %151  ;;  %vm95_vm2 = vcmp.eq.f32.partialorder %v90_v58, inf  ;;  %v98_v63 = vand.u32 2147483648, %v90_v58  ;;  %vm97_vm3 = vcmp.eq.f32.partialorder %v90_v58, 0.0 }
  0x32   :  { %v94_v62 = vmul.f32 %v152_v61, %v90_v58  ;;  %s222_s3 = smov [#allocation4]  }
  0x33   :  { %s112_s19 = sshll.u32 %s222_s3, 4  ;;  %s113_s19 = int_to_ptr.vmem [resolvable:$true] %s112_s19 }
  0x34   :  { %v96_v0 = vsel %vm95_vm2, %v90_v58, %v94_v62  ;;  %s195_s20 = scalar_lea.vmem %s113_s19, 16  ;;  %s199_s21 = scalar_lea.vmem %s113_s19, 32 }
  0x35   :  { %v99_v2 = vsel %vm97_vm3, %v98_v63, %v96_v0  ;;  %p196_p10 = scmp.ne.s32.totalorder %s113_s19, %s195_s20  ;;  %p200_p11 = scmp.lt.s32.totalorder %s113_s19, %s113_s19 }
  0x36   :  { %p201_p12 = scmp.lt.s32.totalorder %s199_s21, %s195_s20 }
  0x38   :  { %p202_p13 = por %p201_p12, %p200_p11 }
  0x3a   :  { %p203_p0 = pnand %p202_p13, %p196_p10 }
  0x3e   :  { %v154_v1 = vpop.eup %153 }
  0x3f   :  { %v101_v3 = vmul.f32 %v154_v1, %v99_v2 }
  0x41   :  { %v102_v4 = vmax.f32 %v101_v3, 1e-05 }
  0x43   :  { %103 = vst.msk [vmem:[#allocation4] sm:$0x1] %vm23_vm1, %v102_v4 }
  0x44   :  { %206 = shalt.err (!%p203_p0)
}
  0x45   :  { %115 = dma.vmem_to_hbm [thread:$0]  %s113_s19, 16, %s308_s2, [#allocation5]  }
  0x46   :  { %215 = dma.done.wait [#allocation5], 16  }
  0x47   :  { %216 = vsyncadd [#allocation5], 4294967280 }
  0x48   :  { %217 = dma.done.wait [#allocation7], 32  }
  0x49   :  { %218 = vsyncadd [#allocation7], 4294967264 }
  0x4a   :  { %145 = vsyncpa [#allocation5], 1 }
  0x4b   :  { %146 = vsyncpa [#allocation7], 1 }

</bundles_post_ra>
